<compile_context>
chip_gen: v7x
topology: tpu7x:2x2x1
jax: 0.10.0
libtpu: 0.0.40
codegen_flags: <defaults>
</compile_context>

<pallas_src>
import jax
import jax.numpy as jnp
from jax.experimental import pallas as pl
from jax.experimental.pallas import tpu as pltpu


# ---------------------------------------------------------------------------
# Fused Pallas kernel: all GCN layers + sentence selector, one document / step
# ---------------------------------------------------------------------------

def fused_gnn_bridge_kernel(h_ref, adj_ref, mask_ref, w_ref, b_ref, wsel_ref,
                            layers_ref, probs_ref):
    """One document per grid step; h stays resident across all layers.

    h_ref      : (D, H)    f32   sentence reps of this document
    adj_ref    : (D, D)    f32   adjacency of this document
    mask_ref   : (1, D)    f32   sentence validity mask (1.0 = valid)
    w_ref      : (L, H, H) bf16  stacked GCN weights   (constant -> VMEM resident)
    b_ref      : (L, 1, H) f32   stacked GCN biases    (constant -> VMEM resident)
    wsel_ref   : (1, H)    f32   selector weight row   (constant -> VMEM resident)
    layers_ref : (L, D, H) bf16  per-layer activations (output)
    probs_ref  : (1, D)    f32   masked-softmax sentence probabilities (output)
    """
    L = w_ref.shape[0]
    h = h_ref[...]                                   # (D, H) f32
    adj_bf = adj_ref[...].astype(jnp.bfloat16)       # (D, D) bf16 MXU operand

    # L is a small static int -> unrolled; h never leaves VMEM between layers.
    for l in range(L):
        # h @ W : bf16 operands, f32 accumulation on the MXU.
        hw = jnp.dot(h.astype(jnp.bfloat16), w_ref[l],
                     preferred_element_type=jnp.float32)          # (D, H) f32
        # Neighborhood aggregation: adj @ (hW).
        # TODO(synk): for very small D an explicit VPU weighted sum (or folding
        # several docs into one block-diagonal matmul) avoids MXU fill/drain waste.
        agg = jnp.dot(adj_bf, hw.astype(jnp.bfloat16),
                      preferred_element_type=jnp.float32)         # (D, H) f32
        h = jnp.maximum(agg + b_ref[l], 0.0)                      # f32 bias + ReLU
        layers_ref[l] = h.astype(layers_ref.dtype)                # bf16 store

    # ---- fused sentence selector: masked softmax over sentences (lane axis) ----
    # Lane-dense (1, D) logits via a single NT matmul: wsel (1,H) @ h (D,H)^T.
    logits = jnp.einsum('oh,dh->od',
                        wsel_ref[...].astype(jnp.bfloat16),
                        h.astype(jnp.bfloat16),
                        preferred_element_type=jnp.float32)       # (1, D)
    m = mask_ref[...]                                             # (1, D)
    masked = jnp.where(m > 0.5, logits, jnp.full_like(logits, -1e9))
    mx = jnp.max(masked, axis=-1, keepdims=True)                  # (1, 1)
    e = jnp.exp(masked - mx) * m
    s = jnp.sum(e, axis=-1, keepdims=True)                        # (1, 1)
    # NOTE: fully-masked documents give 0/0 = NaN, identical to the pure-JAX
    # reference softmax semantics.
    probs_ref[...] = (e / s).astype(probs_ref.dtype)


# ---------------------------------------------------------------------------
# Wrappers
# ---------------------------------------------------------------------------

def _padded_block_bytes(block_shape, dtype):
    """Bytes of one VMEM block with the last two dims padded to (8, 128) tiles."""
    dims = [int(d) for d in block_shape if d is not None]
    if len(dims) == 1:
        dims = [1] + dims
    *lead, r, c = dims
    r_pad = ((r + 7) // 8) * 8
    c_pad = ((c + 127) // 128) * 128
    n = 1
    for d in lead:
        n *= d
    return n * r_pad * c_pad * jnp.dtype(dtype).itemsize


def gnn_bridge_pallas(h_sent3, adj, sent_mask, w_stack, b_stack, w_sel_row,
                      layers_dtype=jnp.bfloat16):
    """h_sent3 (B,D,H) f32, adj (B,D,D) f32, sent_mask (B,D) f32,
    w_stack (L,H,H) bf16, b_stack (L,1,H) f32, w_sel_row (1,H) f32."""
    B, D, H = h_sent3.shape
    L = int(w_stack.shape[0])
    mask3 = sent_mask.reshape(B, 1, D)

    # Explicit VMEM budget from the per-step block footprint (x2 double-buffering
    # + headroom), clamped to stay portable on v5e/v6e/v7x.
    block_list = [
        ((None, D, H), h_sent3.dtype),
        ((None, D, D), adj.dtype),
        ((None, 1, D), mask3.dtype),
        ((L, H, H),    w_stack.dtype),
        ((L, 1, H),    b_stack.dtype),
        ((1, H),       w_sel_row.dtype),
        ((None, L, D, H), layers_dtype),
        ((None, 1, D), jnp.float32),
    ]
    resident = sum(_padded_block_bytes(s, d) for s, d in block_list)
    vmem_limit = int(min(max(2 * resident + (2 << 20), 16 << 20), 48 << 20))

    # TODO(synk): at production sizes pad H (and ideally D) to multiples of 128 on
    # the lane axis so the bf16 activation slab is stored with unmasked vst.
    layers, probs = pl.pallas_call(
        fused_gnn_bridge_kernel,
        out_shape=(jax.ShapeDtypeStruct((B, L, D, H), layers_dtype),
                   jax.ShapeDtypeStruct((B, 1, D), jnp.float32)),
        grid=(B,),
        in_specs=[
            pl.BlockSpec((None, D, H), lambda b: (b, 0, 0)),       # h, per doc
            pl.BlockSpec((None, D, D), lambda b: (b, 0, 0)),       # adj, per doc
            pl.BlockSpec((None, 1, D), lambda b: (b, 0, 0)),       # sentence mask
            pl.BlockSpec((L, H, H),    lambda b: (0, 0, 0)),       # weights (resident)
            pl.BlockSpec((L, 1, H),    lambda b: (0, 0, 0)),       # biases (resident)
            pl.BlockSpec((1, H),       lambda b: (0, 0)),          # selector row
        ],
        out_specs=(
            pl.BlockSpec((None, L, D, H), lambda b: (b, 0, 0, 0)),  # bf16 slab
            pl.BlockSpec((None, 1, D),    lambda b: (b, 0, 0)),     # probs
        ),
        compiler_params=pltpu.CompilerParams(
            dimension_semantics=("parallel",),   # v7x: shard docs over both TCs
            vmem_limit_bytes=vmem_limit),
    )(h_sent3, adj, mask3, w_stack, b_stack, w_sel_row)
    return layers, probs.reshape(B, D)


class GNNBridgeParams:
    def __init__(self, key, hidden, n_layers):
        keys = jax.random.split(key, 2 * n_layers + 1)
        self.gcn_w = [jax.random.normal(keys[2 * i], (hidden, hidden),
                                        dtype=jnp.float32) * (1.0 / jnp.sqrt(hidden))
                      for i in range(n_layers)]
        self.gcn_b = [jnp.zeros((1, hidden), dtype=jnp.float32) for _ in range(n_layers)]
        self.w_sel = jax.random.normal(keys[-1], (1, hidden),
                                       dtype=jnp.float32) * (1.0 / jnp.sqrt(hidden))


def gnn_bridge_forward(params, h_word, h_sent, data_mask, adj,
                       max_sentence_len, question=None):
    """
    h_word:    [B*D*S, H]  (flat, as produced by upstream encoder)
    h_sent:    [B*D,   H]
    data_mask: [B*D*S]
    adj:       [B, D, D]
    Returns (selector_output [B, D], gcn_layers list of [B, D, H]).
    """
    B, D, _ = adj.shape
    H = h_sent.shape[-1]
    S = h_word.shape[0] // (B * D)

    h_sent3 = h_sent.reshape(B, D, H)
    dm = data_mask.reshape(B, D, S)
    sent_mask = (jnp.sum(dm, axis=-1) > 0).astype(jnp.float32)       # (B, D)

    # The original F.pad of h_word to MAX_SENTENCE_LEN is dead work in this forward
    # path (word-level reps are not consumed by the selector as implemented here).
    # TODO(synk): restore the pad if a word-level Sentence_Selector variant is added.
    del h_word, max_sentence_len

    w_stack = jnp.stack(params.gcn_w).astype(jnp.bfloat16)   # (L, H, H) bf16 MXU operands
    b_stack = jnp.stack(params.gcn_b)                         # (L, 1, H) f32
    w_sel_row = params.w_sel                                  # (1, H)    f32
    L = int(w_stack.shape[0])

    layers, probs = gnn_bridge_pallas(
        h_sent3, adj.astype(jnp.float32), sent_mask, w_stack, b_stack, w_sel_row)

    gcn_layers = [h_sent3]
    if question is not None:
        if question.ndim != 3:
            question = jnp.broadcast_to(question[:, None, :],
                                        (B, D, question.shape[-1]))
        else:
            question = question.reshape(B, -1, question.shape[-1])
        gcn_layers.append(question)
    gcn_layers += [layers[:, l] for l in range(L)]                  # (B, D, H) bf16 each
    return probs, gcn_layers


# ---------------------------------------------------------------------------
# Pure-JAX reference (same numerics policy: bf16 MXU operands, f32 accumulation)
# ---------------------------------------------------------------------------

def reference_forward(params, h_sent, data_mask, adj):
    B, D, _ = adj.shape
    H = h_sent.shape[-1]
    h = h_sent.reshape(B, D, H).astype(jnp.float32)
    layers = [h]
    adj_bf = adj.astype(jnp.bfloat16)
    for w, b in zip(params.gcn_w, params.gcn_b):
        hw = jnp.einsum('bdh,hk->bdk', h.astype(jnp.bfloat16), w.astype(jnp.bfloat16),
                        preferred_element_type=jnp.float32)
        agg = jnp.einsum('bij,bjk->bik', adj_bf, hw.astype(jnp.bfloat16),
                         preferred_element_type=jnp.float32)
        h = jnp.maximum(agg + b, 0.0)
        layers.append(h)
    dm = data_mask.reshape(B, D, -1)
    sm = (jnp.sum(dm, axis=-1) > 0).astype(jnp.float32)
    logits = jnp.einsum('bdh,h->bd', h.astype(jnp.bfloat16),
                        params.w_sel[0].astype(jnp.bfloat16),
                        preferred_element_type=jnp.float32)
    masked = jnp.where(sm > 0.5, logits, -1e9)
    masked = masked - jnp.max(masked, axis=-1, keepdims=True)
    e = jnp.exp(masked) * sm
    probs = e / jnp.sum(e, axis=-1, keepdims=True)
    return probs, layers


# ---------------------------------------------------------------------------
# Main
# ---------------------------------------------------------------------------

if __name__ == "__main__":
    # Small shapes consistent with the module:
    B, D, S, H = 2, 8, 16, 32          # batch, docu_len, sent_len, hidden
    MAX_SENTENCE_LEN = 20
    N_LAYERS = 2                        # len(args.d_graph) with the 'gcn' model

    key = jax.random.PRNGKey(0)
    k_p, k_w, k_s, _, _ = jax.random.split(key, 5)

    params = GNNBridgeParams(k_p, H, N_LAYERS)

    h_word = jax.random.normal(k_w, (B * D * S, H), dtype=jnp.float32)
    h_sent = jax.random.normal(k_s, (B * D, H), dtype=jnp.float32)

    # Simple symmetric, row-normalized adjacency (chain + self loops).
    eye = jnp.eye(D, dtype=jnp.float32)
    chain = jnp.roll(eye, 1, axis=1) + jnp.roll(eye, -1, axis=1) + eye
    adj1 = chain / jnp.sum(chain, axis=-1, keepdims=True)
    adj = jnp.broadcast_to(adj1, (B, D, D)).astype(jnp.float32)

    # Word-level mask: last sentence of each doc is fully padded.
    data_mask = jnp.ones((B, D, S), dtype=jnp.float32)
    data_mask = data_mask.at[:, -1, :].set(0.0).reshape(B * D * S)

    out, gcn_layers = gnn_bridge_forward(
        params, h_word, h_sent, data_mask, adj, MAX_SENTENCE_LEN)
    out = jax.block_until_ready(out)

    ref_out, ref_layers = reference_forward(params, h_sent, data_mask, adj)

    # GCN activations: bf16 MXU operands + bf16 output slab -> bf16-level tolerance.
    assert jnp.allclose(gcn_layers[1].astype(jnp.float32), ref_layers[1],
                        atol=2e-2, rtol=2e-2)
    assert jnp.allclose(gcn_layers[-1].astype(jnp.float32), ref_layers[-1],
                        atol=2e-2, rtol=2e-2)
    # Softmax probabilities: exact division, f32 accumulation -> tight tolerance.
    assert jnp.allclose(out, ref_out, atol=5e-3, rtol=5e-3)
    assert out.shape == (B, D) and len(gcn_layers) == N_LAYERS + 1

    print("KERNEL_OK")
</pallas_src>

<mosaic_0001>
module attributes {stable_mosaic.version = 11 : i64} {
  func.func @fused_gnn_bridge_kernel(%arg0: i32, %arg1: memref<1x8x32xf32, #tpu.memory_space<vmem>>, %arg2: memref<1x8x8xf32, #tpu.memory_space<vmem>>, %arg3: memref<1x1x8xf32, #tpu.memory_space<vmem>>, %arg4: memref<2x32x32xbf16, #tpu.memory_space<vmem>>, %arg5: memref<2x1x32xf32, #tpu.memory_space<vmem>>, %arg6: memref<1x32xf32, #tpu.memory_space<vmem>>, %arg7: memref<1x2x8x32xbf16, #tpu.memory_space<vmem>>, %arg8: memref<1x1x8xf32, #tpu.memory_space<vmem>>) attributes {dimension_semantics = [#tpu.dimension_semantics<parallel>], iteration_bounds = array<i64: 2>, scalar_prefetch = 0 : i64, scratch_operands = 0 : i64, tpu.core_type = #tpu.core_type<tc>, window_params = [{transform_indices = @transform_0, window_bounds = array<i64: 1, 8, 32>}, {transform_indices = @transform_1, window_bounds = array<i64: 1, 8, 8>}, {transform_indices = @transform_2, window_bounds = array<i64: 1, 1, 8>}, {pipeline_mode = #tpu.pipeline_mode<synchronous>, transform_indices = @transform_3, window_bounds = array<i64: 2, 32, 32>}, {pipeline_mode = #tpu.pipeline_mode<synchronous>, transform_indices = @transform_4, window_bounds = array<i64: 2, 1, 32>}, {pipeline_mode = #tpu.pipeline_mode<synchronous>, transform_indices = @transform_5, window_bounds = array<i64: 1, 32>}, {transform_indices = @transform_6, window_bounds = array<i64: 1, 2, 8, 32>}, {transform_indices = @transform_7, window_bounds = array<i64: 1, 1, 8>}]} {
    %c0 = arith.constant 0 : index
    %c0_0 = arith.constant 0 : index
    %c0_1 = arith.constant 0 : index
    %0 = vector.load %arg1[%c0, %c0_0, %c0_1] : memref<1x8x32xf32, #tpu.memory_space<vmem>>, vector<1x8x32xf32>
    %1 = vector.shape_cast %0 : vector<1x8x32xf32> to vector<8x32xf32>
    %c0_2 = arith.constant 0 : index
    %c0_3 = arith.constant 0 : index
    %c0_4 = arith.constant 0 : index
    %2 = vector.load %arg2[%c0_2, %c0_3, %c0_4] : memref<1x8x8xf32, #tpu.memory_space<vmem>>, vector<1x8x8xf32>
    %3 = vector.shape_cast %2 : vector<1x8x8xf32> to vector<8x8xf32>
    %4 = arith.truncf %3 : vector<8x8xf32> to vector<8x8xbf16>
    %5 = arith.truncf %1 : vector<8x32xf32> to vector<8x32xbf16>
    %c0_5 = arith.constant 0 : index
    %c0_6 = arith.constant 0 : index
    %c0_7 = arith.constant 0 : index
    %6 = vector.load %arg4[%c0_5, %c0_6, %c0_7] : memref<2x32x32xbf16, #tpu.memory_space<vmem>>, vector<1x32x32xbf16>
    %7 = vector.shape_cast %6 : vector<1x32x32xbf16> to vector<32x32xbf16>
    %cst = arith.constant dense<0.000000e+00> : vector<8x32xf32>
    %8 = tpu.matmul %5, %7, %cst {dimension_numbers = #tpu.dot_dimension_numbers<[1], [0], [0], [1], [0, 0, 1, 1], [], []>} : vector<8x32xbf16>, vector<32x32xbf16>, vector<8x32xf32> -> vector<8x32xf32>
    %9 = arith.truncf %8 : vector<8x32xf32> to vector<8x32xbf16>
    %cst_8 = arith.constant dense<0.000000e+00> : vector<8x32xf32>
    %10 = tpu.matmul %4, %9, %cst_8 {dimension_numbers = #tpu.dot_dimension_numbers<[1], [0], [0], [1], [0, 0, 1, 1], [], []>} : vector<8x8xbf16>, vector<8x32xbf16>, vector<8x32xf32> -> vector<8x32xf32>
    %c0_9 = arith.constant 0 : index
    %c0_10 = arith.constant 0 : index
    %c0_11 = arith.constant 0 : index
    %11 = vector.load %arg5[%c0_9, %c0_10, %c0_11] : memref<2x1x32xf32, #tpu.memory_space<vmem>>, vector<1x1x32xf32>
    %12 = vector.shape_cast %11 : vector<1x1x32xf32> to vector<1x32xf32>
    %13 = vector.broadcast %12 : vector<1x32xf32> to vector<8x32xf32>
    %14 = arith.addf %10, %13 : vector<8x32xf32>
    %cst_12 = arith.constant 0.000000e+00 : f32
    %15 = vector.broadcast %cst_12 : f32 to vector<8x32xf32>
    %16 = arith.maximumf %14, %15 : vector<8x32xf32>
    %17 = arith.truncf %16 : vector<8x32xf32> to vector<8x32xbf16>
    %c0_13 = arith.constant 0 : index
    %c0_14 = arith.constant 0 : index
    %c0_15 = arith.constant 0 : index
    %c0_16 = arith.constant 0 : index
    %18 = vector.load %arg7[%c0_13, %c0_14, %c0_15, %c0_16] : memref<1x2x8x32xbf16, #tpu.memory_space<vmem>>, vector<1x1x8x32xbf16>
    %19 = vector.shape_cast %18 : vector<1x1x8x32xbf16> to vector<8x32xbf16>
    %20 = vector.shape_cast %17 : vector<8x32xbf16> to vector<1x1x8x32xbf16>
    tpu.vector_store %arg7[%c0_13, %c0_14, %c0_15, %c0_16], %20 {strides = array<i32>} : memref<1x2x8x32xbf16, #tpu.memory_space<vmem>>, vector<1x1x8x32xbf16>,
    %21 = arith.truncf %16 : vector<8x32xf32> to vector<8x32xbf16>
    %c1 = arith.constant 1 : index
    %c0_17 = arith.constant 0 : index
    %c0_18 = arith.constant 0 : index
    %22 = vector.load %arg4[%c1, %c0_17, %c0_18] : memref<2x32x32xbf16, #tpu.memory_space<vmem>>, vector<1x32x32xbf16>
    %23 = vector.shape_cast %22 : vector<1x32x32xbf16> to vector<32x32xbf16>
    %cst_19 = arith.constant dense<0.000000e+00> : vector<8x32xf32>
    %24 = tpu.matmul %21, %23, %cst_19 {dimension_numbers = #tpu.dot_dimension_numbers<[1], [0], [0], [1], [0, 0, 1, 1], [], []>} : vector<8x32xbf16>, vector<32x32xbf16>, vector<8x32xf32> -> vector<8x32xf32>
    %25 = arith.truncf %24 : vector<8x32xf32> to vector<8x32xbf16>
    %cst_20 = arith.constant dense<0.000000e+00> : vector<8x32xf32>
    %26 = tpu.matmul %4, %25, %cst_20 {dimension_numbers = #tpu.dot_dimension_numbers<[1], [0], [0], [1], [0, 0, 1, 1], [], []>} : vector<8x8xbf16>, vector<8x32xbf16>, vector<8x32xf32> -> vector<8x32xf32>
    %c1_21 = arith.constant 1 : index
    %c0_22 = arith.constant 0 : index
    %c0_23 = arith.constant 0 : index
    %27 = vector.load %arg5[%c1_21, %c0_22, %c0_23] : memref<2x1x32xf32, #tpu.memory_space<vmem>>, vector<1x1x32xf32>
    %28 = vector.shape_cast %27 : vector<1x1x32xf32> to vector<1x32xf32>
    %29 = vector.broadcast %28 : vector<1x32xf32> to vector<8x32xf32>
    %30 = arith.addf %26, %29 : vector<8x32xf32>
    %cst_24 = arith.constant 0.000000e+00 : f32
    %31 = vector.broadcast %cst_24 : f32 to vector<8x32xf32>
    %32 = arith.maximumf %30, %31 : vector<8x32xf32>
    %33 = arith.truncf %32 : vector<8x32xf32> to vector<8x32xbf16>
    %c0_25 = arith.constant 0 : index
    %c1_26 = arith.constant 1 : index
    %c0_27 = arith.constant 0 : index
    %c0_28 = arith.constant 0 : index
    %34 = vector.load %arg7[%c0_25, %c1_26, %c0_27, %c0_28] : memref<1x2x8x32xbf16, #tpu.memory_space<vmem>>, vector<1x1x8x32xbf16>
    %35 = vector.shape_cast %34 : vector<1x1x8x32xbf16> to vector<8x32xbf16>
    %36 = vector.shape_cast %33 : vector<8x32xbf16> to vector<1x1x8x32xbf16>
    tpu.vector_store %arg7[%c0_25, %c1_26, %c0_27, %c0_28], %36 {strides = array<i32>} : memref<1x2x8x32xbf16, #tpu.memory_space<vmem>>, vector<1x1x8x32xbf16>,
    %c0_29 = arith.constant 0 : index
    %c0_30 = arith.constant 0 : index
    %37 = vector.load %arg6[%c0_29, %c0_30] : memref<1x32xf32, #tpu.memory_space<vmem>>, vector<1x32xf32>
    %38 = arith.truncf %37 : vector<1x32xf32> to vector<1x32xbf16>
    %39 = arith.truncf %32 : vector<8x32xf32> to vector<8x32xbf16>
    "tpu.trace_start"() <{level = 10 : i32, message = "oh,dh->od"}> : () -> ()
    %cst_31 = arith.constant dense<0.000000e+00> : vector<1x8xf32>
    %40 = tpu.matmul %38, %39, %cst_31 {dimension_numbers = #tpu.dot_dimension_numbers<[1], [1], [0], [0], [0, 0, 1, 0], [], []>} : vector<1x32xbf16>, vector<8x32xbf16>, vector<1x8xf32> -> vector<1x8xf32>
    "tpu.trace_stop"() : () -> ()
    %c0_32 = arith.constant 0 : index
    %c0_33 = arith.constant 0 : index
    %c0_34 = arith.constant 0 : index
    %41 = vector.load %arg3[%c0_32, %c0_33, %c0_34] : memref<1x1x8xf32, #tpu.memory_space<vmem>>, vector<1x1x8xf32>
    %42 = vector.shape_cast %41 : vector<1x1x8xf32> to vector<1x8xf32>
    %cst_35 = arith.constant 5.000000e-01 : f32
    %43 = vector.broadcast %cst_35 : f32 to vector<1x8xf32>
    %44 = arith.cmpf ogt, %42, %43 : vector<1x8xf32>
    %cst_36 = arith.constant -1.000000e+09 : f32
    %45 = vector.broadcast %cst_36 : f32 to vector<1x8xf32>
    %46 = arith.select %44, %40, %45 : vector<1x8xi1>, vector<1x8xf32>
    %cst_37 = arith.constant dense<0xFF800000> : vector<1xf32>
    %47 = vector.multi_reduction <maximumf>, %46, %cst_37 [1] : vector<1x8xf32> to vector<1xf32>
    %48 = vector.shape_cast %47 : vector<1xf32> to vector<1x1xf32>
    %49 = vector.broadcast %48 : vector<1x1xf32> to vector<1x8xf32>
    %50 = arith.subf %46, %49 : vector<1x8xf32>
    %51 = math.exp %50 : vector<1x8xf32>
    %52 = arith.mulf %51, %42 : vector<1x8xf32>
    %cst_38 = arith.constant dense<0.000000e+00> : vector<1xf32>
    %53 = vector.multi_reduction <add>, %52, %cst_38 [1] : vector<1x8xf32> to vector<1xf32>
    %54 = vector.shape_cast %53 : vector<1xf32> to vector<1x1xf32>
    %55 = vector.broadcast %54 : vector<1x1xf32> to vector<1x8xf32>
    %56 = arith.divf %52, %55 : vector<1x8xf32>
    %c0_39 = arith.constant 0 : index
    %c0_40 = arith.constant 0 : index
    %c0_41 = arith.constant 0 : index
    %57 = vector.load %arg8[%c0_39, %c0_40, %c0_41] : memref<1x1x8xf32, #tpu.memory_space<vmem>>, vector<1x1x8xf32>
    %58 = vector.shape_cast %57 : vector<1x1x8xf32> to vector<1x8xf32>
    %59 = vector.shape_cast %56 : vector<1x8xf32> to vector<1x1x8xf32>
    tpu.vector_store %arg8[%c0_39, %c0_40, %c0_41], %59 {strides = array<i32>} : memref<1x1x8xf32, #tpu.memory_space<vmem>>, vector<1x1x8xf32>,
    return
  }
  func.func @transform_0(%arg0: i32) -> (i32, i32, i32) {
    %c0_i32 = arith.constant 0 : i32
    %c0_i32_0 = arith.constant 0 : i32
    %c0_i32_1 = arith.constant 0 : i32
    return %arg0, %c0_i32, %c0_i32_0 : i32, i32, i32
  }
  func.func @transform_1(%arg0: i32) -> (i32, i32, i32) {
    %c0_i32 = arith.constant 0 : i32
    %c0_i32_0 = arith.constant 0 : i32
    %c0_i32_1 = arith.constant 0 : i32
    return %arg0, %c0_i32, %c0_i32_0 : i32, i32, i32
  }
  func.func @transform_2(%arg0: i32) -> (i32, i32, i32) {
    %c0_i32 = arith.constant 0 : i32
    %c0_i32_0 = arith.constant 0 : i32
    %c0_i32_1 = arith.constant 0 : i32
    return %arg0, %c0_i32, %c0_i32_0 : i32, i32, i32
  }
  func.func @transform_3(%arg0: i32) -> (i32, i32, i32) {
    %c0_i32 = arith.constant 0 : i32
    %c0_i32_0 = arith.constant 0 : i32
    %c0_i32_1 = arith.constant 0 : i32
    %c0_i32_2 = arith.constant 0 : i32
    return %c0_i32, %c0_i32_0, %c0_i32_1 : i32, i32, i32
  }
  func.func @transform_4(%arg0: i32) -> (i32, i32, i32) {
    %c0_i32 = arith.constant 0 : i32
    %c0_i32_0 = arith.constant 0 : i32
    %c0_i32_1 = arith.constant 0 : i32
    %c0_i32_2 = arith.constant 0 : i32
    return %c0_i32, %c0_i32_0, %c0_i32_1 : i32, i32, i32
  }
  func.func @transform_5(%arg0: i32) -> (i32, i32) {
    %c0_i32 = arith.constant 0 : i32
    %c0_i32_0 = arith.constant 0 : i32
    %c0_i32_1 = arith.constant 0 : i32
    return %c0_i32, %c0_i32_0 : i32, i32
  }
  func.func @transform_6(%arg0: i32) -> (i32, i32, i32, i32) {
    %c0_i32 = arith.constant 0 : i32
    %c0_i32_0 = arith.constant 0 : i32
    %c0_i32_1 = arith.constant 0 : i32
    %c0_i32_2 = arith.constant 0 : i32
    return %arg0, %c0_i32, %c0_i32_0, %c0_i32_1 : i32, i32, i32, i32
  }
  func.func @transform_7(%arg0: i32) -> (i32, i32, i32) {
    %c0_i32 = arith.constant 0 : i32
    %c0_i32_0 = arith.constant 0 : i32
    %c0_i32_1 = arith.constant 0 : i32
    return %arg0, %c0_i32, %c0_i32_0 : i32, i32, i32
  }
}

</mosaic_0001>

<bundles_post_ra>
// kernel: tpu_custom_call.1
= control target key start
LH: loop header
LB: loop body
LE: loop exit
PB: predicated region body
PF: predicated region fallthrough
CT: control target
= control target key end

     0   :  { %s1560_s0 = inlined_call_operand.hbm [shape: f32[2,8,32], index: 0, kind: input, shape index: {}]   ;;  %s1561_s1 = inlined_call_operand.hbm [shape: f32[2,8,8], index: 1, kind: input, shape index: {}]   ;;  %s1562_s2 = inlined_call_operand.vmem [shape: f32[2,1,8], index: 2, kind: input, shape index: {}]   ;;  %s1563_s3 = inlined_call_operand.hbm [shape: bf16[2,32,32], index: 3, kind: input, shape index: {}]   ;;  %s1564_s4 = inlined_call_operand.vmem [shape: f32[2,1,32], index: 4, kind: input, shape index: {}]   ;;  %s1565_s5 = inlined_call_operand.vmem [shape: f32[1,32], index: 5, kind: input, shape index: {}]   ;;  %s1566_s6 = inlined_call_operand.hbm [shape: bf16[2,2,8,32], index: 6, kind: output, shape index: {0}]   ;;  %s1567_s7 = inlined_call_operand.hbm [shape: f32[2,1,8], index: 7, kind: output, shape index: {1}]  }
   0x1   :  { %1575 = sst [smem:[#allocation19_spill]] %s1563_s3 }
   0x2   :  { %13 = vsyncpa [#allocation3], 0 }
   0x3   :  { %15 = vsyncpa [#allocation3 + $0x1], 0 }
   0x4   :  { %16 = vsyncpa [#allocation6], 0 }
   0x5   :  { %18 = vsyncpa [#allocation6 + $0x1], 0 }
   0x6   :  { %19 = vsyncpa [#allocation4], 0 }
   0x7   :  { %21 = vsyncpa [#allocation4 + $0x1], 0 }
   0x8   :  { %22 = vsyncpa [#allocation10], 0 }
   0x9   :  { %24 = vsyncpa [#allocation10 + $0x1], 0  ;;  %s1255_s24 = smov 0   ;;  %s1257_s25 = smov 0  }
   0xa   :  { %s1259_s26 = smov 0   ;;  %s1261_s27 = smov 0  }
   0xb LB: > { %1576 = sst [smem:[#allocation16_spill]] %s1198_s26  ;;  %s1276_s28 = sadd.s32 4294967295, %s1202_s27   ;;  %s1202_s27 = sphi %s1261_s27, %s1594_s27   ;;  %s1198_s26 = sphi %s1259_s26, %s1596_s26   ;;  %s1194_s25 = sphi %s1257_s25, %s1598_s25   ;;  %s1190_s24 = sphi %s1255_s24, %s1597_s24  }
   0xc   : > { %s848_s29 = sadd.s32 4294967294, %s1202_s27   ;;  %p50_p0 = scmp.ne.s32.totalorder %s1194_s25, %s1190_s24 }
   0xd   : > { %p1568_p1 = scmp.eq.s32.totalorder %s1276_s28, 0  ;;  %p195_p3 = scmp.eq.s32.totalorder %s848_s29, 1 }
   0xe   : > { %p849_p5 = scmp.ge.s32.totalorder %s1202_s27, 1  ;;  %p228_p7 = scmp.lt.s32.totalorder %s1202_s27, 3 }
   0xf   : > { %p1285_p4 = por %p1568_p1, %p50_p0  ;;  %p1290_p6 = por %p195_p3, %p50_p0 }
  0x10   : > { %p1295_p8 = pnand %p849_p5, %p228_p7  ;;  %s1204_s10 = smov [#allocation7]  }
  0x11   : > { %s1577_s30 = scalar_select %p1285_p4, 1, 0 }
  0x12   : > { %s1578_s8 = scalar_select %p1290_p6, 1, 0 }
  0x13   : > { %s1579_s9 = scalar_select %p1295_p8, 1, 0 }
  0x14   : > { %s240_s11 = sshll.u32 %s1204_s10, 4  ;;  %p939_p9 = pneg %p1295_p8  ;;  %s1299_s11 = int_to_ptr.vmem [resolvable:$true] %s240_s11 }
  0x15   : > { %s1311_s13 = sadd.s32 1, %s1202_s27   ;;  %s37_s14 = sadd.s32 1, %s1198_s26 }
  0x16   : > { %p1306_p11 = pnand %p939_p9, %p1568_p1  ;;  %1581 = sst [smem:[#allocation17_spill]] %s1311_s13 }
  0x17   : > { %s34_s15 = ssub.s32 %s1202_s27, %s1311_s13  ;;  %s1582_s3 = sld [smem:[#allocation19_spill]] }
  0x18   : > { %p1010_p13 = pneg %p1306_p11 }
  0x1d   : > { %s1008_s18 = scalar_lea.hbm %s1582_s3, 512 }
  0x1e   : > { %p1009_p12 = scmp.ne.s32.totalorder %s1582_s3, %s1008_s18  ;;  %p1015_p5 = scmp.lt.u32.totalorder %s1008_s18, %s1582_s3 }
  0x20   : > { %p1011_p0 = pnand %p1010_p13, %p1009_p12 }
  0x22   : > { %p1012_p3 = pneg %p1011_p0 }
  0x24   : > { %p1017_p7 = pnand %p1015_p5, %p1012_p3 }
  0x26   : > { %1020 = shalt.err (!%p1017_p7)
}
  0x27   : > { %s1021_s23 = scalar_lea.vmem %s1299_s11, 512  ;;  %p1029_p2 = scmp.lt.s32.totalorder %s1299_s11, %s1299_s11 }
  0x28   : > { %p1022_p9 = scmp.ne.s32.totalorder %s1299_s11, %s1021_s23  ;;  %p1030_p6 = scmp.lt.s32.totalorder %s1021_s23, %s1021_s23 }
  0x2a   : > { %p1024_p10 = pnand %p1022_p9, %p1010_p13  ;;  %p1031_p4 = por %p1030_p6, %p1029_p2 }
  0x2c   : > { %p1025_p1 = pneg %p1024_p10 }
  0x2e   : > { %p1032_p8 = pnand %p1031_p4, %p1025_p1 }
  0x30   : > { %1035 = shalt.err (!%p1032_p8)
}
  0x31   : > { %s1205_s29 = smov 64   ;;  %s1206_s10 = smov 4  }
  0x32   : > { %942 = dma.hbm_to_vmem [thread:$0]  (!%p1306_p11), %s1582_s3, 512, %s1299_s11, [#allocation6], %s1205_s29, %s1205_s29, %s1206_s10  }
  0x33   : > { %p35_p2 = scmp.eq.s32.totalorder %s34_s15, 0  ;;  %p44_p1 = scmp.ne.s32.totalorder %s1198_s26, %s1194_s25 }
  0x34   : > { %p45_p4 = scmp.eq.s32.totalorder %s1202_s27, 0  ;;  %p958_p6 = scmp.lt.s32.totalorder %s1202_s27, 2 }
  0x35   : > { %s1342_s18 = scalar_select %p35_p2, %s1198_s26, %s37_s14  }
  0x36   : > { %p46_p8 = por %p45_p4, %p44_p1  ;;  %p1584_p10 = scmp.eq.s32.totalorder %s1276_s28, 1 }
  0x37   : > { %1583 = sst [smem:[#allocation18_spill]] %s1342_s18  ;;  %s260_s20 = sand.u32 1, %s1198_s26  }
  0x38   : > { %p1346_p12 = por %p1584_p10, %p44_p1  ;;  %s853_s21 = sshll.u32 %s1202_s27, 7 }
  0x39   : > { %s1352_s22 = sshll.u32 %s260_s20, 3  ;;  %s1357_s11 = scalar_lea.hbm %s1560_s0, %s853_s21 }
  0x3a   : > { %s1585_s19 = scalar_select %p1346_p12, 1, 0 }
  0x3b   : > { %s264_s14 = scalar_lea.vmem [#allocation2], %s1352_s22  ;;  %p1360_p11 = pnand %p958_p6, %p46_p8 }
  0x3c   : > { %s271_s15 = sshll.u32 %s264_s14, 4  ;;  %s1369_s17 = scalar_lea.hbm %s1561_s1, %s853_s21  ;;  %s1364_s15 = int_to_ptr.vmem [resolvable:$true] %s271_s15 }
  0x3d   : > { %s261_s12 = scalar_lea.sflag [#allocation3], %s260_s20  ;;  %s1036_s23 = scalar_lea.hbm %s1357_s11, 128 }
  0x3e   : > { %p1037_p13 = scmp.ne.s32.totalorder %s1357_s11, %s1036_s23  ;;  %p1038_p0 = pneg %p1360_p11 }
  0x3f   : > { %s1041_s18 = scalar_lea.hbm %s1560_s0, 256  ;;  %p1042_p7 = scmp.lt.u32.totalorder %s1357_s11, %s1560_s0 }
  0x40   : > { %p1039_p3 = pnand %p1038_p0, %p1037_p13  ;;  %p1043_p9 = scmp.lt.u32.totalorder %s1041_s18, %s1036_s23 }
  0x41   : > { %p1045_p1 = scmp.lt.u32.totalorder %s1036_s23, %s1357_s11 }
  0x42   : > { %p1040_p5 = pneg %p1039_p3  ;;  %p1044_p2 = por %p1043_p9, %p1042_p7 }
  0x44   : > { %p1046_p4 = por %p1045_p1, %p1044_p2 }
  0x46   : > { %p1047_p6 = pnand %p1046_p4, %p1040_p5 }
  0x48   : > { %1050 = shalt.err (!%p1047_p6)
}
  0x49   : > { %s1051_s20 = scalar_lea.vmem %s1364_s15, 128  ;;  %s1207_s3 = smov [#allocation2]  }
  0x4a   : > { %p1052_p8 = scmp.ne.s32.totalorder %s1364_s15, %s1051_s20  ;;  %s1056_s21 = sshll.u32 %s1207_s3, 4  ;;  %s1057_s21 = int_to_ptr.vmem [resolvable:$false] %s1056_s21 }
  0x4b   : > { %s1058_s26 = scalar_lea.vmem %s1057_s21, 256  ;;  %p1059_p3 = scmp.lt.s32.totalorder %s1364_s15, %s1057_s21 }
  0x4c   : > { %p1054_p10 = pnand %p1052_p8, %p1038_p0  ;;  %p1060_p7 = scmp.lt.s32.totalorder %s1058_s26, %s1051_s20 }
  0x4e   : > { %p1055_p13 = pneg %p1054_p10  ;;  %p1061_p9 = por %p1060_p7, %p1059_p3 }
  0x50   : > { %p1062_p2 = pnand %p1061_p9, %p1055_p13 }
  0x52   : > { %1065 = shalt.err (!%p1062_p2)
}
  0x53   : > { %946 = dma.hbm_to_vmem [thread:$0]  (!%p1360_p11), %s1357_s11, 128, %s1364_s15, %s261_s12  }
  0x54   : > { %s278_s13 = sand.u32 1, %s1202_s27   ;;  %s282_s18 = scalar_lea.vmem [#allocation5], %s1352_s22 }
  0x55   : > { %s289_s10 = sshll.u32 %s282_s18, 4  ;;  %s279_s16 = scalar_lea.sflag [#allocation6], %s278_s13  ;;  %s290_s10 = int_to_ptr.vmem [resolvable:$true] %s289_s10 }
  0x56   : > { %s1066_s23 = scalar_lea.hbm %s1369_s17, 128  ;;  %s1071_s3 = scalar_lea.hbm %s1561_s1, 256 }
  0x57   : > { %p1067_p5 = scmp.ne.s32.totalorder %s1369_s17, %s1066_s23  ;;  %p1072_p6 = scmp.lt.u32.totalorder %s1369_s17, %s1561_s1 }
  0x58   : > { %p1073_p8 = scmp.lt.u32.totalorder %s1071_s3, %s1066_s23  ;;  %p1075_p13 = scmp.lt.u32.totalorder %s1066_s23, %s1369_s17 }
  0x59   : > { %p1069_p1 = pnand %p1067_p5, %p1038_p0 }
  0x5a   : > { %p1074_p10 = por %p1073_p8, %p1072_p6 }
  0x5b   : > { %p1070_p4 = pneg %p1069_p1 }
  0x5c   : > { %p1076_p3 = por %p1075_p13, %p1074_p10 }
  0x5e   : > { %p1077_p7 = pnand %p1076_p3, %p1070_p4 }
  0x60   : > { %1080 = shalt.err (!%p1077_p7)
}
  0x61   : > { %s1081_s22 = scalar_lea.vmem %s290_s10, 128  ;;  %s1208_s11 = smov [#allocation5]  }
  0x62   : > { %p1082_p9 = scmp.ne.s32.totalorder %s290_s10, %s1081_s22  ;;  %s1086_s15 = sshll.u32 %s1208_s11, 4  ;;  %s1087_s15 = int_to_ptr.vmem [resolvable:$false] %s1086_s15 }
  0x63   : > { %s1088_s12 = scalar_lea.vmem %s1087_s15, 256  ;;  %p1089_p1 = scmp.lt.s32.totalorder %s290_s10, %s1087_s15 }
  0x64   : > { %p1084_p2 = pnand %p1082_p9, %p1038_p0  ;;  %p1090_p12 = scmp.lt.s32.totalorder %s1088_s12, %s1081_s22 }
  0x66   : > { %p1085_p5 = pneg %p1084_p2  ;;  %p1091_p6 = por %p1090_p12, %p1089_p1 }
  0x68   : > { %p1092_p8 = pnand %p1091_p6, %p1085_p5 }
  0x6a   : > { %1095 = shalt.err (!%p1092_p8)
}
  0x6b   : > { %949 = dma.hbm_to_vmem [thread:$0]  (!%p1360_p11), %s1369_s17, 128, %s290_s10, %s279_s16  }
  0x6c   : > { %p1587_p4 = scmp.ne.s32.totalorder %s1579_s9, 0 }
  0x6d   : > { %s1420_s13 = sand.u32 (!%p1587_p4), 1, %s1194_s25   ;;  %p1588_p12 = scmp.ne.s32.totalorder (!%p1587_p4), %s1577_s30, 0 }
  0x6e   : > { %304 = sbr.rel (%p1587_p4) target bundleno = 1557 (0x615), region = 44  ;;  %s1423_s18 = sshll.u32 (!%p1587_p4), %s1420_s13, 3 }
  0x6f   : > { %s307_s23 = scalar_lea.sflag (!%p1587_p4), [#allocation3], %s1420_s13  ;;  %s310_s14 = scalar_lea.vmem (!%p1587_p4), [#allocation2], %s1423_s18 }
  0x75   : > { %1169 = dma.done.wait (%p1588_p12), %s307_s23, 128  }
  0x76   : > { %1171 = vsyncadd (%p1588_p12), %s307_s23, 4294967168  ;;  %s315_s9 = sand.u32 1, %s1276_s28   ;;  %s319_s17 = scalar_lea.vmem [#allocation5], %s1423_s18 }
  0x77   : > { %s316_s29 = scalar_lea.sflag [#allocation6], %s315_s9 }
  0x78   : > { %1173 = dma.done.wait (%p1588_p12), %s316_s29, 128  }
  0x79   : > { %1175 = vsyncadd (%p1588_p12), %s316_s29, 4294967168  ;;  %p1589_p11 = scmp.eq.s32.totalorder %s1276_s28, 0 }
  0x7b   : > { %1177 = dma.done.wait (%p1589_p11), [#allocation6], 512   ;;  %p1590_p0 = pmov %p1589_p11 }
  0x7c   : > { %v1209_v0 = vmov 0.0   ;;  %vm1210_vm0 = vmmov 0   ;;  %v1000_v1 = vld [vmem:[#allocation7] sm:$0xff]   ;;  %v1001_v2 = vld [vmem:[#allocation7 + $0x8] sm:$0xff]   ;;  %vm390_vm1 = vcmask 261120   ;;  %vm446_vm2 = vcmask 1043456  }
  0x7d   : > { %1179 = vsyncadd (%p1590_p0), [#allocation6], 4294966784  ;;  %893 = vmatprep.subr.bf16.mxu0 %v1209_v0  ;;  %897 = vmatprep.mubr.msk.bf16.mxu0 %vm1210_vm0, %v1209_v0  ;;  %v370_v3 = vld [vmem:[%s310_s14] sm:$0xff]  ;;  %v371_v6 = vld [vmem:[%s319_s17] sm:$0xff]  ;;  %vm442_vm3 = vcmask 64512   ;;  %vm492_vm4 = vcmask 257024  }
  0x7e   : > { %901 = vmatprep.subr.bf16.mxu1 %v1209_v0  ;;  %903 = vmatprep.mubr.msk.bf16.mxu1 %vm1210_vm0, %v1209_v0  ;;  %v373_v4 = vpack.c.bf16 %v370_v3, %v370_v3  ;;  %v372_v12 = vpack.c.bf16 %v371_v6, %v371_v6  ;;  %v1002_v13 = vld [vmem:[#allocation7 + $0x10] sm:$0xff]   ;;  %v1003_v14 = vld [vmem:[#allocation7 + $0x18] sm:$0xff]   ;;  %v864_v15 = vld [vmem:[%s1564_s4] ss:$0 sm:$0xff]  ;;  %s1452_s16 = scalar_lea.vmem [#allocation8], %s1423_s18  ;;  %p366_p10 = scmp.lt.s32.totalorder %s1276_s28, 1 }
  0x7f   : > { %894 = vmatpush3.bf16.msra.mxu0 %v1000_v1  ;;  %v870_v29 = vld [vmem:[%s1564_s4 + $0x1] ss:$0 sm:$0xff]  ;;  %v610_v38 = vld [vmem:[%s1565_s5] sm:$0x1]  ;;  %vm661_vm6 = vcmask 57344   ;;  %s880_s18 = sshll.u32 %s1276_s28, 7 }
  0x80   : > { %895 = vmatprep.subr.bf16.mxu0 %v1209_v0  ;;  %v611_v39 = vpack.c.bf16 %v610_v38, %v610_v38  ;;  %s367_s22 = scalar_select %p366_p10, %s1276_s28, 1 }
  0x81   : > { %s1481_s9 = scalar_lea.hbm %s1566_s6, %s880_s18  ;;  %s693_s29 = sshll.u32 %s1452_s16, 4  ;;  %s1484_s29 = int_to_ptr.vmem [resolvable:$true] %s693_s29 }
  0x82   : > { %s368_s12 = scalar_lea.vmem %s1562_s2, %s367_s22  ;;  %s676_s17 = scalar_lea.sflag [#allocation4], %s1420_s13 }
  0x83   : > { %896 = vmatpush3.bf16.msra.mxu0 %v1001_v2  ;;  %v658_v40 = vld [vmem:[%s368_s12] sm:$0x1]  ;;  %s1096_s30 = scalar_lea.vmem %s1484_s29, 128  ;;  %p1591_p3 = scmp.ne.s32.totalorder %s1585_s19, 0 }
  0x84   : > { %915 = vmatprep.subr.bf16.mxu0 %v1209_v0  ;;  %vm659_vm5 = vcmp.gt.f32.partialorder %v658_v40, 0.5  ;;  %p1097_p13 = scmp.ne.s32.totalorder %s1484_s29, %s1096_s30  ;;  %s1211_s10 = smov [#allocation8]  }
  0x85   : > { %s1100_s20 = sshll.u32 %s1211_s10, 4  ;;  %s1101_s20 = int_to_ptr.vmem [resolvable:$false] %s1100_s20 }
  0x86   : > { %898 = vmatmul.mubr.msk.bf16.vlgmr.msra.gmra.mrb[0].mxu0 %vm390_vm1, %v373_v4  ;;  %p1098_p7 = pnand %p1097_p13, %p1591_p3  ;;  %s1102_s3 = scalar_lea.vmem %s1101_s20, 256 }
  0x87   : > { %917 = vmatprep.mubr.msk.bf16.mxu0 %vm1210_vm0, %v1209_v0  ;;  %p1103_p2 = scmp.lt.s32.totalorder %s1484_s29, %s1101_s20  ;;  %p1104_p5 = scmp.lt.s32.totalorder %s1102_s3, %s1096_s30 }
  0x88   : > { %p1099_p9 = pneg %p1098_p7 }
  0x89   : > { %p1105_p1 = por %p1104_p5, %p1103_p2 }
  0x8b   : > { %p1106_p6 = pnand %p1105_p1, %p1099_p9 }
 0x159   : > { %v428_v5 = vpop.f32.mrb[0].mxu0 }
 0x15a   : > { %v434_v7 = vpack.c.bf16 %v428_v5, %v428_v5  ;;  %v899_v8 = vpop.f32.mrb[1].mxu0 }
 0x15b   : > { %v431_v9 = vpop.f32.mrb[2].mxu0 }
 0x15c   : > { %v900_v10 = vpop.f32.mrb[3].mxu0  ;;  %v448_v11 = vsel %vm446_vm2, %v434_v7, 0 }
 0x15d   : > { %902 = vmatpush3.bf16.msra.mxu1 %v448_v11 }
 0x15e   : > { %907 = vmatprep.subr.bf16.mxu1 %v1209_v0 }
 0x160   : > { %904 = vmatmul.mubr.msk.bf16.vlgmr.msra.gmra.mrb[0].mxu1 %vm442_vm3, %v372_v12 }
 0x161   : > { %911 = vmatprep.mubr.msk.bf16.mxu1 %vm1210_vm0, %v1209_v0  ;;  %908 = vmatpush3.bf16.msra.mxu1 %v1002_v13 }
 0x162   : > { %909 = vmatprep.subr.bf16.mxu1 %v1209_v0 }
 0x165   : > { %910 = vmatpush3.bf16.msra.mxu1 %v1003_v14 }
 0x166   : > { %921 = vmatprep.subr.bf16.mxu1 %v1209_v0 }
 0x233   : > { %v484_v16 = vpop.f32.mrb[0].mxu1 }
 0x234   : > { %v485_v17 = vadd.f32 %v864_v15, %v484_v16  ;;  %v905_v18 = vpop.f32.mrb[1].mxu1 }
 0x235   : > { %v487_v19 = vpop.f32.mrb[2].mxu1 }
 0x236   : > { %v490_v20 = vmax.f32 %v485_v17, 0.0  ;;  %v906_v21 = vpop.f32.mrb[3].mxu1 }
 0x238   : > { %v491_v22 = vpack.c.bf16 %v490_v20, %v490_v20 }
 0x23a   : > { %493 = vst.msk [vmem:[%s1452_s16] sm:$0xf] %vm492_vm4, %v491_v22  ;;  %912 = vmatmul.mubr.msk.bf16.vlgmr.msra.gmra.mrb[4].mxu1 %vm390_vm1, %v491_v22 }
 0x23b   : > { %923 = vmatprep.mubr.msk.bf16.mxu1 %vm1210_vm0, %v1209_v0 }
 0x30d   : > { %v548_v23 = vpop.f32.mrb[4].mxu1 }
 0x30e   : > { %v554_v24 = vpack.c.bf16 %v548_v23, %v548_v23  ;;  %v913_v25 = vpop.f32.mrb[5].mxu1 }
 0x30f   : > { %v551_v26 = vpop.f32.mrb[6].mxu1 }
 0x310   : > { %v564_v27 = vsel %vm446_vm2, %v554_v24, 0  ;;  %v914_v28 = vpop.f32.mrb[7].mxu1 }
 0x311   : > { %916 = vmatpush3.bf16.msra.mxu0 %v564_v27 }
 0x314   : > { %918 = vmatmul.mubr.msk.bf16.vlgmr.msra.gmra.mrb[4].mxu0 %vm442_vm3, %v372_v12 }
 0x3e7   : > { %v600_v30 = vpop.f32.mrb[4].mxu0 }
 0x3e8   : > { %v601_v31 = vadd.f32 %v870_v29, %v600_v30  ;;  %v919_v32 = vpop.f32.mrb[5].mxu0 }
 0x3e9   : > { %v603_v33 = vpop.f32.mrb[6].mxu0 }
 0x3ea   : > { %v606_v34 = vmax.f32 %v601_v31, 0.0  ;;  %v920_v35 = vpop.f32.mrb[7].mxu0 }
 0x3ec   : > { %v607_v36 = vpack.c.bf16 %v606_v34, %v606_v34 }
 0x3ee   : > { %872 = vst.msk [vmem:[%s1452_s16 + $0x4] sm:$0xf] %vm492_vm4, %v607_v36  ;;  %v616_v37 = vsel %vm390_vm1, %v607_v36, 0 }
 0x3ef   : > { %922 = vmatpush3.bf16.xpose.msra.mxu1 %v616_v37 }
 0x3f6   : > { %924 = vmatmul.mubr.msk.bf16.vlgmr.msra.gmra.mrb[8].mxu1 %vm390_vm1, %v611_v39 }
 0x4c9   : > { %v652_v41 = vpop.f32.mrb[8].mxu1 }
 0x4ca   : > { %v660_v42 = vsel %vm659_vm5, %v652_v41, -1e+09  ;;  %v925_v43 = vpop.f32.mrb[9].mxu1 }
 0x4cb   : > { %v662_v44 = vsel %vm661_vm6, %v660_v42, -inf  ;;  %v655_v45 = vpop.f32.mrb[10].mxu1 }
 0x4cc   : > { %663 = vmax.xlane.f32.xlu0 %v662_v44  ;;  %v926_v46 = vpop.f32.mrb[11].mxu1 }
 0x559   : > { %v664_v47 = vpop.xlane.xlu0 %663 }
 0x55a   : > { %v665_v48 = vsub.f32 %v660_v42, %v664_v47 }
 0x55c   : > { %v666_v49 = vmul.f32 1.442695, %v665_v48 }
 0x55e   : > { %1004 = vpow2.f32 %v666_v49 }
 0x568   : > { %v1005_v50 = vpop.eup %1004 }
 0x569   : > { %v668_v51 = vmul.f32 %v1005_v50, %v658_v40 }
 0x56b   : > { %v669_v52 = vsel %vm661_vm6, %v668_v51, 0.0 }
 0x56c   : > { %670 = vadd.xlane.f32.xlu0 %v669_v52 }
 0x56d   : > { %1109 = shalt.err (!%p1106_p6)
}
 0x56e   : > { %s1110_s16 = scalar_lea.hbm %s1481_s9, 128  ;;  %s1114_s22 = scalar_lea.hbm %s1566_s6, 256 }
 0x56f   : > { %p1111_p8 = scmp.ne.s32.totalorder %s1481_s9, %s1110_s16  ;;  %p1115_p11 = scmp.lt.u32.totalorder %s1481_s9, %s1566_s6 }
 0x570   : > { %p1116_p0 = scmp.lt.u32.totalorder %s1114_s22, %s1110_s16  ;;  %p1118_p13 = scmp.lt.u32.totalorder %s1110_s16, %s1481_s9 }
 0x571   : > { %p1112_p4 = pnand %p1111_p8, %p1591_p3 }
 0x572   : > { %p1117_p10 = por %p1116_p0, %p1115_p11 }
 0x573   : > { %p1113_p12 = pneg %p1112_p4 }
 0x574   : > { %p1119_p7 = por %p1118_p13, %p1117_p10 }
 0x576   : > { %p1120_p9 = pnand %p1119_p7, %p1113_p12 }
 0x578   : > { %1123 = shalt.err (!%p1120_p9)
}
 0x579   : > { %s1212_s12 = smov 64   ;;  %s1213_s18 = smov 4  }
 0x57a   : > { %935 = dma.vmem_to_hbm [thread:$0]  (%p1591_p3), %s1484_s29, 128, %s1481_s9, %s676_s17, %s1212_s12, %s1212_s12, %s1213_s18  }
 0x57b   : > { %s877_s23 = sshll.u32 %s1276_s28, 4  ;;  %s365_s14 = scalar_lea.vmem [#allocation9], %s1420_s13 }
 0x57c   : > { %s709_s30 = sshll.u32 %s365_s14, 4  ;;  %s1515_s3 = scalar_lea.hbm %s1567_s7, %s877_s23  ;;  %s1517_s30 = int_to_ptr.vmem [resolvable:$true] %s709_s30 }
 0x57d   : > { %s681_s9 = scalar_lea.sflag [#allocation10], %s1420_s13  ;;  %s1124_s29 = scalar_lea.vmem %s1517_s30, 16 }
 0x57e   : > { %p1125_p2 = scmp.ne.s32.totalorder %s1517_s30, %s1124_s29  ;;  %s1214_s28 = smov [#allocation9]  }
 0x57f   : > { %s1128_s17 = sshll.u32 %s1214_s28, 4  ;;  %s1129_s17 = int_to_ptr.vmem [resolvable:$false] %s1128_s17 }
 0x580   : > { %p1126_p5 = pnand %p1125_p2, %p1591_p3  ;;  %s1130_s16 = scalar_lea.vmem %s1129_s17, 32 }
 0x581   : > { %p1131_p6 = scmp.lt.s32.totalorder %s1517_s30, %s1129_s17  ;;  %p1132_p8 = scmp.lt.s32.totalorder %s1130_s16, %s1124_s29 }
 0x582   : > { %p1127_p1 = pneg %p1126_p5 }
 0x583   : > { %p1133_p4 = por %p1132_p8, %p1131_p6 }
 0x585   : > { %p1134_p12 = pnand %p1133_p4, %p1127_p1 }
 0x5f9   : > { %v671_v53 = vpop.xlane.xlu0 %670 }
 0x5fa   : > { %1006 = vrcp.f32 %v671_v53 }
 0x604   : > { %v1007_v54 = vpop.eup %1006 }
 0x605   : > { %v673_v55 = vmul.f32 %v1007_v54, %v668_v51 }
 0x607   : > { %674 = vst.msk [vmem:[%s365_s14] sm:$0x1] %vm661_vm6, %v673_v55 }
 0x608   : > { %1137 = shalt.err (!%p1134_p12)
}
 0x609   : > { %s1138_s13 = scalar_lea.hbm %s1515_s3, 16  ;;  %s1142_s22 = scalar_lea.hbm %s1567_s7, 32 }
 0x60a   : > { %p1139_p11 = scmp.ne.s32.totalorder %s1515_s3, %s1138_s13  ;;  %p1143_p13 = scmp.lt.u32.totalorder %s1515_s3, %s1567_s7 }
 0x60b   : > { %p1144_p7 = scmp.lt.u32.totalorder %s1142_s22, %s1138_s13  ;;  %p1146_p2 = scmp.lt.u32.totalorder %s1138_s13, %s1515_s3 }
 0x60c   : > { %p1140_p0 = pnand %p1139_p11, %p1591_p3 }
 0x60d   : > { %p1145_p9 = por %p1144_p7, %p1143_p13 }
 0x60e   : > { %p1141_p10 = pneg %p1140_p0 }
 0x60f   : > { %p1147_p5 = por %p1146_p2, %p1145_p9 }
 0x611   : > { %p1148_p1 = pnand %p1147_p5, %p1141_p10 }
 0x613   : > { %1151 = shalt.err (!%p1148_p1)
}
 0x614   : > { %936 = dma.vmem_to_hbm [thread:$0]  (%p1591_p3), %s1517_s30, 16, %s1515_s3, %s681_s9  }
 0x615 PF: > { %s721_s12 = sand.u32 1, %s1190_s24   ;;  %p1592_p6 = scmp.ne.s32.totalorder %s1578_s8, 0 }
 0x616   : > { %p1593_p8 = scmp.ge.s32.totalorder %s1202_s27, 2  ;;  %s722_s18 = scalar_lea.sflag [#allocation4], %s721_s12 }
 0x618   : > { %p951_p4 = pnand %p1593_p8, %p1592_p6 }
 0x61a   : > { %1181 = dma.done.wait (!%p951_p4), %s722_s18, 128  }
 0x61b   : > { %1183 = vsyncadd (!%p951_p4), %s722_s18, 4294967168  ;;  %s731_s23 = scalar_lea.sflag [#allocation10], %s721_s12 }
 0x61c   : > { %1185 = dma.done.wait (!%p951_p4), %s731_s23, 16  }
 0x61d   : > { %1187 = vsyncadd (!%p951_p4), %s731_s23, 4294967280  ;;  %s1594_s27 = sld [smem:[#allocation17_spill]]  ;;  %s1595_s19 = sld [smem:[#allocation16_spill]] }
 0x61e   : > { %s1596_s26 = sld [smem:[#allocation18_spill]]  ;;  %s1597_s24 = smov %s1194_s25 }
 0x623   : > { %p27_p3 = scmp.ge.s32.totalorder %s1594_s27, 4   ;;  %s1598_s25 = smov %s1595_s19 }
 0x625   :  { %29 = sbr.rel (!%p27_p3) target bundleno = 11 (0xb), region = 129 }
 0x62c   :  { %735 = vsyncpa [#allocation3], 1 }
 0x62d   :  { %737 = vsyncpa [#allocation3 + $0x1], 1 }
 0x62e   :  { %738 = vsyncpa [#allocation6], 1 }
 0x62f   :  { %740 = vsyncpa [#allocation6 + $0x1], 1 }
 0x630   :  { %741 = vsyncpa [#allocation4], 1 }
 0x631   :  { %743 = vsyncpa [#allocation4 + $0x1], 1 }
 0x632   :  { %744 = vsyncpa [#allocation10], 1 }
 0x633   :  { %746 = vsyncpa [#allocation10 + $0x1], 1 }

</bundles_post_ra>
